<compile_context>
chip_gen: v5e
topology: v5e:2x2
jax: 0.10.0
libtpu: 0.0.40
codegen_flags: <defaults>
</compile_context>

<pallas_src>
import functools

import jax
import jax.numpy as jnp
import numpy as np
from jax.experimental import pallas as pl
from jax.experimental.pallas import tpu as pltpu

_SQRT1_2 = 0.7071067811865476
_LOG_HALF = -0.6931471805599453
_HALF_LOG_2PI = 0.9189385332046727  # 0.5 * log(2*pi)


def _log_erfc(z):
    # log(erfc(z)) via the Numerical-Recipes rational approximation (rel err ~1e-7),
    # evaluated in log-space so far-tail values do not underflow.  Only exp/log/abs/
    # where, all of which lower cleanly in Mosaic (no erf primitive needed).
    az = jnp.abs(z)
    t = 1.0 / (1.0 + 0.5 * az)
    poly = -1.26551223 + t * (1.00002368 + t * (0.37409196 + t * (0.09678418 +
           t * (-0.18628806 + t * (0.27886807 + t * (-1.13520398 + t * (1.48851587 +
           t * (-0.82215223 + t * 0.17087277))))))))
    log_erfc_pos = jnp.log(t) - az * az + poly
    erfc_pos = jnp.exp(log_erfc_pos)
    return jnp.where(z >= 0.0, log_erfc_pos, jnp.log(2.0 - erfc_pos))


def _log_ndtr(x):
    # log Phi(x): standard normal log-CDF (stand-in for gp.log_normal_cdf).
    return _LOG_HALF + _log_erfc(-x * _SQRT1_2)


def _tlr_kernel(y_ref, xb_ref, sigma_ref, out_ref, *,
                l_thred, r_thred, n_valid, tn, needs_mask):
    # Blocks: y (TB, TN), Xb (TB, TN), sigma (TB, 1), out (TB, 1) resident over j.
    j = pl.program_id(1)

    @pl.when(j == 0)
    def _init():
        out_ref[...] = jnp.zeros_like(out_ref)

    y = y_ref[...]           # (TB, TN)
    xb = xb_ref[...]         # (TB, TN)
    sigma = sigma_ref[...]   # (TB, 1)

    scale = jnp.exp(sigma)                  # exp_sigma, per-batch column
    inv_scale = 1.0 / scale                 # one tiny (TB,1) divide, reused 3x

    a = (l_thred - xb) * inv_scale          # _l
    b = (r_thred - xb) * inv_scale          # _r
    val_std = (y - xb) * inv_scale

    log_sf_a = _log_ndtr(-a)                # log Phi(-a)
    log_sf_b = _log_ndtr(-b)                # log Phi(-b)

    ids1 = jnp.logical_and(a <= 30.0, b >= -30.0)
    use_a_branch = jnp.logical_and(
        ids1, jnp.logical_or(b < 0.0, jnp.abs(a) >= jnp.abs(b)))
    # Select the branch inputs first so a single exp/log1p serves both branches.
    base = jnp.where(use_a_branch, log_sf_b, log_sf_a)
    diff = jnp.where(use_a_branch, log_sf_a - log_sf_b, log_sf_b - log_sf_a)
    logdelta = base + jnp.log1p(-jnp.exp(diff))

    # N(0,1).log_prob(val_std) - logdelta - log(scale);  log(exp(sigma)) == sigma.
    lp = (-0.5 * val_std * val_std - _HALF_LOG_2PI) - logdelta - sigma
    lp = jnp.where(jnp.logical_or(val_std < a, val_std > b), -jnp.inf, lp)

    if needs_mask:
        # Zero out padded sample columns so they do not contribute to the sum.
        col = jax.lax.broadcasted_iota(jnp.int32, lp.shape, 1) + j * tn
        lp = jnp.where(col < n_valid, lp, 0.0)

    out_ref[...] += jnp.sum(lp, axis=-1, keepdims=True)


def _round_up(x, m):
    return (x + m - 1) // m * m


def tlr_forward(y, X, beta, sigma, l_thred, r_thred, *, tb=8, tn=512):
    """Pallas TPU forward of TLR: returns sum_n log_prob, shape (B,)."""
    B, N, P = X.shape
    # Hoist the tiny (N,P)@(P,) matvec to XLA: Xb has the same shape as y, so the
    # kernel streams 2*B*N floats instead of (P+1)*B*N and no HBM transpose of X.
    xb = jnp.einsum("bnp,bp->bn", X.astype(jnp.float32), beta.astype(jnp.float32))
    y = y.astype(jnp.float32)
    sigma2d = sigma.astype(jnp.float32).reshape(B, 1)

    tb = max(8, (tb // 8) * 8)                    # fill sublanes
    tn = max(128, (tn // 128) * 128)              # lane-aligned
    tn = min(tn, _round_up(N, 128))

    Bp = _round_up(B, tb)
    Np = _round_up(N, tn)

    y_p = jnp.pad(y, ((0, Bp - B), (0, Np - N)))
    xb_p = jnp.pad(xb, ((0, Bp - B), (0, Np - N)))
    sg_p = jnp.pad(sigma2d, ((0, Bp - B), (0, 0)))

    kernel = functools.partial(
        _tlr_kernel, l_thred=float(l_thred), r_thred=float(r_thred),
        n_valid=N, tn=tn, needs_mask=(Np != N))

    out = pl.pallas_call(
        kernel,
        out_shape=jax.ShapeDtypeStruct((Bp, 1), jnp.float32),
        grid_spec=pltpu.PrefetchScalarGridSpec(
            num_scalar_prefetch=0,
            grid=(Bp // tb, Np // tn),            # sample (reduction) axis last
            in_specs=[
                pl.BlockSpec((tb, tn), lambda i, j: (i, j)),   # y
                pl.BlockSpec((tb, tn), lambda i, j: (i, j)),   # Xb
                pl.BlockSpec((tb, 1), lambda i, j: (i, 0)),    # sigma
            ],
            out_specs=pl.BlockSpec((tb, 1), lambda i, j: (i, 0)),
        ),
        compiler_params=pltpu.CompilerParams(
            dimension_semantics=("parallel", "arbitrary")),
    )(y_p, xb_p, sg_p)
    return out[:B, 0]


def tlr_reference(y, X, beta, sigma, l_thred, r_thred):
    """Pure-JAX reference with the torch-style math (for a sanity check)."""
    xb = jnp.einsum("bnp,bp->bn", X, beta)
    scale = jnp.exp(sigma)[:, None]
    a = (l_thred - xb) / scale
    b = (r_thred - xb) / scale
    val_std = (y - xb) / scale
    log_sf_a = _log_ndtr(-a)
    log_sf_b = _log_ndtr(-b)
    ids1 = (a <= 30.0) & (b >= -30.0)
    use_a = ids1 & ((b < 0.0) | (jnp.abs(a) >= jnp.abs(b)))
    ld2 = log_sf_b + jnp.log1p(-jnp.exp(log_sf_a - log_sf_b))
    ld3 = log_sf_a + jnp.log1p(-jnp.exp(log_sf_b - log_sf_a))
    logdelta = jnp.where(use_a, ld2, ld3)
    lp = -0.5 * val_std * val_std - _HALF_LOG_2PI - logdelta - jnp.log(scale)
    lp = jnp.where((val_std < a) | (val_std > b), -jnp.inf, lp)
    return jnp.sum(lp, axis=-1)


if __name__ == "__main__":
    B, N, P = 10, 200, 8          # small, deliberately not multiples of 8/128
    l_thred, r_thred = -4.0, 8.0

    key = jax.random.PRNGKey(0)
    kx, kb, kn = jax.random.split(key, 3)
    X = jax.random.normal(kx, (B, N, P), dtype=jnp.float32)
    beta_true = 0.1 * jax.random.normal(kb, (B, P), dtype=jnp.float32)
    noise = jax.random.normal(kn, (B, N), dtype=jnp.float32)
    y = jnp.clip(jnp.einsum("bnp,bp->bn", X, beta_true) + noise,
                 l_thred + 1.0, r_thred - 1.0)

    # Deterministic parameter init mimicking TLR.__init__ (per-batch lstsq on the
    # uncensored samples); host-side numpy glue, not part of the hot path.
    y_np, X_np = np.asarray(y), np.asarray(X)
    init_beta, init_sigma = [], []
    for bidx in range(B):
        mid = (y_np[bidx] > l_thred) & (y_np[bidx] < r_thred)
        yy, XX = y_np[bidx][mid], X_np[bidx][mid]
        if yy.shape[0] != 0:
            bb = np.linalg.lstsq(XX, yy, rcond=None)[0]
            ss = float((yy - XX @ bb) @ (yy - XX @ bb) / yy.shape[0])
        else:
            bb = np.zeros((P,), dtype=np.float32)
            ss = 1.0
        init_beta.append(bb)
        init_sigma.append(ss)
    beta = jnp.asarray(np.stack(init_beta), dtype=jnp.float32)    # (B, P)
    sigma = jnp.asarray(np.array(init_sigma), dtype=jnp.float32)  # (B,)

    # Default tiling (single N step) and a small-TN run that exercises the
    # multi-step accumulation + padded-column masking path.
    out_a = tlr_forward(y, X, beta, sigma, l_thred, r_thred)
    out_b = tlr_forward(y, X, beta, sigma, l_thred, r_thred, tn=128)
    out_a, out_b = jax.block_until_ready((out_a, out_b))

    ref = tlr_reference(y, X, beta, sigma, l_thred, r_thred)
    assert out_a.shape == (B,) and out_b.shape == (B,)
    assert np.allclose(np.asarray(out_a), np.asarray(ref),
                       rtol=1e-3, atol=1e-2, equal_nan=True), (out_a, ref)
    assert np.allclose(np.asarray(out_b), np.asarray(ref),
                       rtol=1e-3, atol=1e-2, equal_nan=True), (out_b, ref)
    print("KERNEL_OK")
</pallas_src>

<mosaic_0001>
module attributes {stable_mosaic.version = 11 : i64} {
  func.func @_tlr_kernel(%arg0: i32, %arg1: i32, %arg2: memref<8x256xf32, #tpu.memory_space<vmem>>, %arg3: memref<8x256xf32, #tpu.memory_space<vmem>>, %arg4: memref<8x1xf32, #tpu.memory_space<vmem>>, %arg5: memref<8x1xf32, #tpu.memory_space<vmem>>) attributes {dimension_semantics = [#tpu.dimension_semantics<parallel>, #tpu.dimension_semantics<arbitrary>], iteration_bounds = array<i64: 2, 1>, scalar_prefetch = 0 : i64, scratch_operands = 0 : i64, tpu.core_type = #tpu.core_type<tc>, window_params = [{transform_indices = @transform_0, window_bounds = array<i64: 8, 256>}, {transform_indices = @transform_1, window_bounds = array<i64: 8, 256>}, {transform_indices = @transform_2, window_bounds = array<i64: 8, 1>}, {transform_indices = @transform_3, window_bounds = array<i64: 8, 1>}]} {
    %c0_i32 = arith.constant 0 : i32
    %0 = arith.cmpi eq, %arg1, %c0_i32 : i32
    %1 = arith.extui %0 : i1 to i32
    %c0_i32_0 = arith.constant 0 : i32
    %2 = arith.cmpi ne, %1, %c0_i32_0 : i32
    scf.if %2 {
      %cst_59 = arith.constant 0.000000e+00 : f32
      %175 = vector.broadcast %cst_59 : f32 to vector<8x1xf32>
      %c0_60 = arith.constant 0 : index
      %c0_61 = arith.constant 0 : index
      %176 = vector.load %arg5[%c0_60, %c0_61] : memref<8x1xf32, #tpu.memory_space<vmem>>, vector<8x1xf32>
      tpu.vector_store %arg5[%c0_60, %c0_61], %175 {strides = array<i32>} : memref<8x1xf32, #tpu.memory_space<vmem>>, vector<8x1xf32>,
    } else {
    }
    %c0 = arith.constant 0 : index
    %c0_1 = arith.constant 0 : index
    %3 = vector.load %arg2[%c0, %c0_1] : memref<8x256xf32, #tpu.memory_space<vmem>>, vector<8x256xf32>
    %c0_2 = arith.constant 0 : index
    %c0_3 = arith.constant 0 : index
    %4 = vector.load %arg3[%c0_2, %c0_3] : memref<8x256xf32, #tpu.memory_space<vmem>>, vector<8x256xf32>
    %c0_4 = arith.constant 0 : index
    %c0_5 = arith.constant 0 : index
    %5 = vector.load %arg4[%c0_4, %c0_5] : memref<8x1xf32, #tpu.memory_space<vmem>>, vector<8x1xf32>
    %6 = math.exp %5 : vector<8x1xf32>
    %cst = arith.constant 1.000000e+00 : f32
    %7 = vector.broadcast %cst : f32 to vector<8x1xf32>
    %8 = arith.divf %7, %6 : vector<8x1xf32>
    %cst_6 = arith.constant -4.000000e+00 : f32
    %9 = vector.broadcast %cst_6 : f32 to vector<8x256xf32>
    %10 = arith.subf %9, %4 : vector<8x256xf32>
    %11 = vector.broadcast %8 : vector<8x1xf32> to vector<8x256xf32>
    %12 = arith.mulf %10, %11 : vector<8x256xf32>
    %cst_7 = arith.constant 8.000000e+00 : f32
    %13 = vector.broadcast %cst_7 : f32 to vector<8x256xf32>
    %14 = arith.subf %13, %4 : vector<8x256xf32>
    %15 = vector.broadcast %8 : vector<8x1xf32> to vector<8x256xf32>
    %16 = arith.mulf %14, %15 : vector<8x256xf32>
    %17 = arith.subf %3, %4 : vector<8x256xf32>
    %18 = vector.broadcast %8 : vector<8x1xf32> to vector<8x256xf32>
    %19 = arith.mulf %17, %18 : vector<8x256xf32>
    %cst_8 = arith.constant 0.000000e+00 : f32
    %20 = vector.broadcast %cst_8 : f32 to vector<8x256xf32>
    %21 = arith.subf %20, %12 : vector<8x256xf32>
    %cst_9 = arith.constant 0.000000e+00 : f32
    %22 = vector.broadcast %cst_9 : f32 to vector<8x256xf32>
    %23 = arith.subf %22, %21 : vector<8x256xf32>
    %cst_10 = arith.constant 0.707106769 : f32
    %24 = vector.broadcast %cst_10 : f32 to vector<8x256xf32>
    %25 = arith.mulf %23, %24 : vector<8x256xf32>
    %26 = math.absf %25 : vector<8x256xf32>
    %cst_11 = arith.constant 5.000000e-01 : f32
    %27 = vector.broadcast %cst_11 : f32 to vector<8x256xf32>
    %28 = arith.mulf %27, %26 : vector<8x256xf32>
    %cst_12 = arith.constant 1.000000e+00 : f32
    %29 = vector.broadcast %cst_12 : f32 to vector<8x256xf32>
    %30 = arith.addf %29, %28 : vector<8x256xf32>
    %cst_13 = arith.constant 1.000000e+00 : f32
    %31 = vector.broadcast %cst_13 : f32 to vector<8x256xf32>
    %32 = arith.divf %31, %30 : vector<8x256xf32>
    %cst_14 = arith.constant 0.170872763 : f32
    %33 = vector.broadcast %cst_14 : f32 to vector<8x256xf32>
    %34 = arith.mulf %32, %33 : vector<8x256xf32>
    %cst_15 = arith.constant -0.822152256 : f32
    %35 = vector.broadcast %cst_15 : f32 to vector<8x256xf32>
    %36 = arith.addf %35, %34 : vector<8x256xf32>
    %37 = arith.mulf %32, %36 : vector<8x256xf32>
    %cst_16 = arith.constant 1.48851585 : f32
    %38 = vector.broadcast %cst_16 : f32 to vector<8x256xf32>
    %39 = arith.addf %38, %37 : vector<8x256xf32>
    %40 = arith.mulf %32, %39 : vector<8x256xf32>
    %cst_17 = arith.constant -1.13520396 : f32
    %41 = vector.broadcast %cst_17 : f32 to vector<8x256xf32>
    %42 = arith.addf %41, %40 : vector<8x256xf32>
    %43 = arith.mulf %32, %42 : vector<8x256xf32>
    %cst_18 = arith.constant 0.278868079 : f32
    %44 = vector.broadcast %cst_18 : f32 to vector<8x256xf32>
    %45 = arith.addf %44, %43 : vector<8x256xf32>
    %46 = arith.mulf %32, %45 : vector<8x256xf32>
    %cst_19 = arith.constant -0.186288059 : f32
    %47 = vector.broadcast %cst_19 : f32 to vector<8x256xf32>
    %48 = arith.addf %47, %46 : vector<8x256xf32>
    %49 = arith.mulf %32, %48 : vector<8x256xf32>
    %cst_20 = arith.constant 0.0967841818 : f32
    %50 = vector.broadcast %cst_20 : f32 to vector<8x256xf32>
    %51 = arith.addf %50, %49 : vector<8x256xf32>
    %52 = arith.mulf %32, %51 : vector<8x256xf32>
    %cst_21 = arith.constant 0.374091953 : f32
    %53 = vector.broadcast %cst_21 : f32 to vector<8x256xf32>
    %54 = arith.addf %53, %52 : vector<8x256xf32>
    %55 = arith.mulf %32, %54 : vector<8x256xf32>
    %cst_22 = arith.constant 1.00002372 : f32
    %56 = vector.broadcast %cst_22 : f32 to vector<8x256xf32>
    %57 = arith.addf %56, %55 : vector<8x256xf32>
    %58 = arith.mulf %32, %57 : vector<8x256xf32>
    %cst_23 = arith.constant -1.26551223 : f32
    %59 = vector.broadcast %cst_23 : f32 to vector<8x256xf32>
    %60 = arith.addf %59, %58 : vector<8x256xf32>
    %61 = math.log %32 : vector<8x256xf32>
    %62 = arith.mulf %26, %26 : vector<8x256xf32>
    %63 = arith.subf %61, %62 : vector<8x256xf32>
    %64 = arith.addf %63, %60 : vector<8x256xf32>
    %65 = math.exp %64 : vector<8x256xf32>
    %cst_24 = arith.constant 0.000000e+00 : f32
    %66 = vector.broadcast %cst_24 : f32 to vector<8x256xf32>
    %67 = arith.cmpf oge, %25, %66 : vector<8x256xf32>
    %cst_25 = arith.constant 2.000000e+00 : f32
    %68 = vector.broadcast %cst_25 : f32 to vector<8x256xf32>
    %69 = arith.subf %68, %65 : vector<8x256xf32>
    %70 = math.log %69 : vector<8x256xf32>
    %71 = arith.select %67, %64, %70 : vector<8x256xi1>, vector<8x256xf32>
    %cst_26 = arith.constant -0.693147182 : f32
    %72 = vector.broadcast %cst_26 : f32 to vector<8x256xf32>
    %73 = arith.addf %72, %71 : vector<8x256xf32>
    %cst_27 = arith.constant 0.000000e+00 : f32
    %74 = vector.broadcast %cst_27 : f32 to vector<8x256xf32>
    %75 = arith.subf %74, %16 : vector<8x256xf32>
    %cst_28 = arith.constant 0.000000e+00 : f32
    %76 = vector.broadcast %cst_28 : f32 to vector<8x256xf32>
    %77 = arith.subf %76, %75 : vector<8x256xf32>
    %cst_29 = arith.constant 0.707106769 : f32
    %78 = vector.broadcast %cst_29 : f32 to vector<8x256xf32>
    %79 = arith.mulf %77, %78 : vector<8x256xf32>
    %80 = math.absf %79 : vector<8x256xf32>
    %cst_30 = arith.constant 5.000000e-01 : f32
    %81 = vector.broadcast %cst_30 : f32 to vector<8x256xf32>
    %82 = arith.mulf %81, %80 : vector<8x256xf32>
    %cst_31 = arith.constant 1.000000e+00 : f32
    %83 = vector.broadcast %cst_31 : f32 to vector<8x256xf32>
    %84 = arith.addf %83, %82 : vector<8x256xf32>
    %cst_32 = arith.constant 1.000000e+00 : f32
    %85 = vector.broadcast %cst_32 : f32 to vector<8x256xf32>
    %86 = arith.divf %85, %84 : vector<8x256xf32>
    %cst_33 = arith.constant 0.170872763 : f32
    %87 = vector.broadcast %cst_33 : f32 to vector<8x256xf32>
    %88 = arith.mulf %86, %87 : vector<8x256xf32>
    %cst_34 = arith.constant -0.822152256 : f32
    %89 = vector.broadcast %cst_34 : f32 to vector<8x256xf32>
    %90 = arith.addf %89, %88 : vector<8x256xf32>
    %91 = arith.mulf %86, %90 : vector<8x256xf32>
    %cst_35 = arith.constant 1.48851585 : f32
    %92 = vector.broadcast %cst_35 : f32 to vector<8x256xf32>
    %93 = arith.addf %92, %91 : vector<8x256xf32>
    %94 = arith.mulf %86, %93 : vector<8x256xf32>
    %cst_36 = arith.constant -1.13520396 : f32
    %95 = vector.broadcast %cst_36 : f32 to vector<8x256xf32>
    %96 = arith.addf %95, %94 : vector<8x256xf32>
    %97 = arith.mulf %86, %96 : vector<8x256xf32>
    %cst_37 = arith.constant 0.278868079 : f32
    %98 = vector.broadcast %cst_37 : f32 to vector<8x256xf32>
    %99 = arith.addf %98, %97 : vector<8x256xf32>
    %100 = arith.mulf %86, %99 : vector<8x256xf32>
    %cst_38 = arith.constant -0.186288059 : f32
    %101 = vector.broadcast %cst_38 : f32 to vector<8x256xf32>
    %102 = arith.addf %101, %100 : vector<8x256xf32>
    %103 = arith.mulf %86, %102 : vector<8x256xf32>
    %cst_39 = arith.constant 0.0967841818 : f32
    %104 = vector.broadcast %cst_39 : f32 to vector<8x256xf32>
    %105 = arith.addf %104, %103 : vector<8x256xf32>
    %106 = arith.mulf %86, %105 : vector<8x256xf32>
    %cst_40 = arith.constant 0.374091953 : f32
    %107 = vector.broadcast %cst_40 : f32 to vector<8x256xf32>
    %108 = arith.addf %107, %106 : vector<8x256xf32>
    %109 = arith.mulf %86, %108 : vector<8x256xf32>
    %cst_41 = arith.constant 1.00002372 : f32
    %110 = vector.broadcast %cst_41 : f32 to vector<8x256xf32>
    %111 = arith.addf %110, %109 : vector<8x256xf32>
    %112 = arith.mulf %86, %111 : vector<8x256xf32>
    %cst_42 = arith.constant -1.26551223 : f32
    %113 = vector.broadcast %cst_42 : f32 to vector<8x256xf32>
    %114 = arith.addf %113, %112 : vector<8x256xf32>
    %115 = math.log %86 : vector<8x256xf32>
    %116 = arith.mulf %80, %80 : vector<8x256xf32>
    %117 = arith.subf %115, %116 : vector<8x256xf32>
    %118 = arith.addf %117, %114 : vector<8x256xf32>
    %119 = math.exp %118 : vector<8x256xf32>
    %cst_43 = arith.constant 0.000000e+00 : f32
    %120 = vector.broadcast %cst_43 : f32 to vector<8x256xf32>
    %121 = arith.cmpf oge, %79, %120 : vector<8x256xf32>
    %cst_44 = arith.constant 2.000000e+00 : f32
    %122 = vector.broadcast %cst_44 : f32 to vector<8x256xf32>
    %123 = arith.subf %122, %119 : vector<8x256xf32>
    %124 = math.log %123 : vector<8x256xf32>
    %125 = arith.select %121, %118, %124 : vector<8x256xi1>, vector<8x256xf32>
    %cst_45 = arith.constant -0.693147182 : f32
    %126 = vector.broadcast %cst_45 : f32 to vector<8x256xf32>
    %127 = arith.addf %126, %125 : vector<8x256xf32>
    %cst_46 = arith.constant 3.000000e+01 : f32
    %128 = vector.broadcast %cst_46 : f32 to vector<8x256xf32>
    %129 = arith.cmpf ole, %12, %128 : vector<8x256xf32>
    %cst_47 = arith.constant -3.000000e+01 : f32
    %130 = vector.broadcast %cst_47 : f32 to vector<8x256xf32>
    %131 = arith.cmpf oge, %16, %130 : vector<8x256xf32>
    %132 = arith.andi %129, %131 : vector<8x256xi1>
    %cst_48 = arith.constant 0.000000e+00 : f32
    %133 = vector.broadcast %cst_48 : f32 to vector<8x256xf32>
    %134 = arith.cmpf olt, %16, %133 : vector<8x256xf32>
    %135 = math.absf %12 : vector<8x256xf32>
    %136 = math.absf %16 : vector<8x256xf32>
    %137 = arith.cmpf oge, %135, %136 : vector<8x256xf32>
    %138 = arith.ori %134, %137 : vector<8x256xi1>
    %139 = arith.andi %132, %138 : vector<8x256xi1>
    %140 = arith.select %139, %127, %73 : vector<8x256xi1>, vector<8x256xf32>
    %141 = arith.subf %73, %127 : vector<8x256xf32>
    %142 = arith.subf %127, %73 : vector<8x256xf32>
    %143 = arith.select %139, %141, %142 : vector<8x256xi1>, vector<8x256xf32>
    %144 = math.exp %143 : vector<8x256xf32>
    %cst_49 = arith.constant 0.000000e+00 : f32
    %145 = vector.broadcast %cst_49 : f32 to vector<8x256xf32>
    %146 = arith.subf %145, %144 : vector<8x256xf32>
    %147 = math.log1p %146 : vector<8x256xf32>
    %148 = arith.addf %140, %147 : vector<8x256xf32>
    %cst_50 = arith.constant -5.000000e-01 : f32
    %149 = vector.broadcast %cst_50 : f32 to vector<8x256xf32>
    %150 = arith.mulf %149, %19 : vector<8x256xf32>
    %151 = arith.mulf %150, %19 : vector<8x256xf32>
    %cst_51 = arith.constant 0.918938517 : f32
    %152 = vector.broadcast %cst_51 : f32 to vector<8x256xf32>
    %153 = arith.subf %151, %152 : vector<8x256xf32>
    %154 = arith.subf %153, %148 : vector<8x256xf32>
    %155 = vector.broadcast %5 : vector<8x1xf32> to vector<8x256xf32>
    %156 = arith.subf %154, %155 : vector<8x256xf32>
    %157 = arith.cmpf olt, %19, %12 : vector<8x256xf32>
    %158 = arith.cmpf ogt, %19, %16 : vector<8x256xf32>
    %159 = arith.ori %157, %158 : vector<8x256xi1>
    %cst_52 = arith.constant 0xFF800000 : f32
    %160 = vector.broadcast %cst_52 : f32 to vector<8x256xf32>
    %161 = arith.select %159, %160, %156 : vector<8x256xi1>, vector<8x256xf32>
    %162 = tpu.iota {dimensions = array<i32: 1>} : vector<8x256xi32>
    %c256_i32 = arith.constant 256 : i32
    %163 = arith.muli %arg1, %c256_i32 : i32
    %164 = vector.broadcast %163 : i32 to vector<8x256xi32>
    %165 = arith.addi %162, %164 : vector<8x256xi32>
    %c200_i32 = arith.constant 200 : i32
    %166 = vector.broadcast %c200_i32 : i32 to vector<8x256xi32>
    %167 = arith.cmpi slt, %165, %166 : vector<8x256xi32>
    %cst_53 = arith.constant 0.000000e+00 : f32
    %168 = vector.broadcast %cst_53 : f32 to vector<8x256xf32>
    %169 = arith.select %167, %161, %168 : vector<8x256xi1>, vector<8x256xf32>
    %c0_54 = arith.constant 0 : index
    %c0_55 = arith.constant 0 : index
    %170 = vector.load %arg5[%c0_54, %c0_55] : memref<8x1xf32, #tpu.memory_space<vmem>>, vector<8x1xf32>
    %cst_56 = arith.constant dense<0.000000e+00> : vector<8xf32>
    %171 = vector.multi_reduction <add>, %169, %cst_56 [1] : vector<8x256xf32> to vector<8xf32>
    %172 = vector.shape_cast %171 : vector<8xf32> to vector<8x1xf32>
    %173 = arith.addf %170, %172 : vector<8x1xf32>
    %c0_57 = arith.constant 0 : index
    %c0_58 = arith.constant 0 : index
    %174 = vector.load %arg5[%c0_57, %c0_58] : memref<8x1xf32, #tpu.memory_space<vmem>>, vector<8x1xf32>
    tpu.vector_store %arg5[%c0_57, %c0_58], %173 {strides = array<i32>} : memref<8x1xf32, #tpu.memory_space<vmem>>, vector<8x1xf32>,
    return
  }
  func.func @transform_0(%arg0: i32, %arg1: i32) -> (i32, i32) {
    %c0_i32 = arith.constant 0 : i32
    return %arg0, %arg1 : i32, i32
  }
  func.func @transform_1(%arg0: i32, %arg1: i32) -> (i32, i32) {
    %c0_i32 = arith.constant 0 : i32
    return %arg0, %arg1 : i32, i32
  }
  func.func @transform_2(%arg0: i32, %arg1: i32) -> (i32, i32) {
    %c0_i32 = arith.constant 0 : i32
    %c0_i32_0 = arith.constant 0 : i32
    return %arg0, %c0_i32 : i32, i32
  }
  func.func @transform_3(%arg0: i32, %arg1: i32) -> (i32, i32) {
    %c0_i32 = arith.constant 0 : i32
    %c0_i32_0 = arith.constant 0 : i32
    return %arg0, %c0_i32 : i32, i32
  }
}

</mosaic_0001>

<bundles_post_ra>
// kernel: tpu_custom_call.1
= control target key start
LH: loop header
LB: loop body
LE: loop exit
PB: predicated region body
PF: predicated region fallthrough
CT: control target
= control target key end

     0   :  { %8 = vsyncpa [#allocation3], 0  ;;  %s1311_s0 = inlined_call_operand.hbm [shape: f32[16,256], index: 0, kind: input, shape index: {}]   ;;  %s1312_s1 = inlined_call_operand.hbm [shape: f32[16,256], index: 1, kind: input, shape index: {}]   ;;  %s1313_s2 = inlined_call_operand.vmem [shape: f32[16,1], index: 2, kind: input, shape index: {}]   ;;  %s1314_s3 = inlined_call_operand.vmem [shape: f32[16,1], index: 3, kind: output, shape index: {}]  }
   0x1   :  { %10 = vsyncpa [#allocation3 + $0x1], 0 }
   0x2   :  { %11 = vsyncpa [#allocation5], 0 }
   0x3   :  { %13 = vsyncpa [#allocation5 + $0x1], 0  ;;  %s994_s12 = smov 0   ;;  %s996_s13 = smov 0  }
   0x4   :  { %s998_s14 = smov 0   ;;  %s1000_s15 = smov 0  }
   0x5   :  { %s1002_s16 = smov 0   ;;  %s1004_s17 = smov 0  }
   0x6 LB: > { %s728_s18 = sadd.s32 4294967295, %s970_s17   ;;  %s31_s19 = sadd.s32 1, %s966_s16  ;;  %s970_s17 = sphi %s1004_s17, %s19_s17   ;;  %s966_s16 = sphi %s1002_s16, %s1340_s16   ;;  %s962_s15 = sphi %s1000_s15, %s1339_s15   ;;  %s958_s14 = sphi %s998_s14, %s1338_s14   ;;  %s954_s13 = sphi %s996_s13, %s1337_s13   ;;  %s950_s12 = sphi %s994_s12, %s1336_s12  }
   0x7   : > { %p33_p0 = scmp.ge.s32.totalorder %s31_s19, 2  ;;  %s40_s20 = sadd.s32 1, %s958_s14 }
   0x8   : > { %p47_p1 = scmp.ne.s32.totalorder %s958_s14, %s954_s13  ;;  %p48_p2 = scmp.eq.s32.totalorder %s970_s17, 0 }
   0x9   : > { %s1342_s19 = smov (%p33_p0, %s31_s19), 0  ;;  %p53_p4 = scmp.ne.s32.totalorder %s954_s13, %s950_s12 }
   0xa   : > { %p1030_p3 = por %p48_p2, %p47_p1  ;;  %s35_s22 = ssub.s32 %s966_s16, %s1342_s19 }
   0xb   : > { %p54_p5 = scmp.eq.s32.totalorder %s728_s18, 0  ;;  %p38_p6 = scmp.eq.s32.totalorder %s35_s22, 0 }
   0xc   : > { %p760_p8 = scmp.lt.s32.totalorder %s970_s17, 2  ;;  %s157_s25 = sand.u32 1, %s958_s14  }
   0xd   : > { %p1037_p7 = por %p54_p5, %p53_p4  ;;  %s747_s26 = sshll.u32 %s966_s16, 4 }
   0xe   : > { %s1043_s24 = scalar_select %p38_p6, %s958_s14, %s40_s20  }
   0xf   : > { %s732_s27 = sshll.u32 %s157_s25, 4  ;;  %s168_s30 = scalar_lea.hbm %s1311_s0, %s747_s26 }
  0x10   : > { %s170_s4 = sshll.u32 %s168_s30, 4  ;;  %s161_s5 = scalar_lea.vmem [#allocation2], %s732_s27  ;;  %s171_s4 = int_to_ptr.hbm [resolvable:$true] %s170_s4 }
  0x11   : > { %s172_s6 = sshll.u32 %s161_s5, 4  ;;  %p754_p9 = pnand %p760_p8, %p1030_p3  ;;  %s173_s6 = int_to_ptr.vmem [resolvable:$true] %s172_s6 }
  0x12   : > { %p738_p10 = scmp.ge.s32.totalorder %s970_s17, 1  ;;  %p206_p11 = scmp.lt.s32.totalorder %s970_s17, 3 }
  0x13   : > { %s158_s7 = scalar_lea.sflag [#allocation3], %s157_s25  ;;  %s190_s10 = scalar_lea.hbm %s1312_s1, %s747_s26 }
  0x14   : > { %756 = dma.hbm_to_vmem [thread:$0]  (!%p754_p9), %s171_s4, 256, %s173_s6, %s158_s7  }
  0x15   : > { %p207_p12 = pnand %p738_p10, %p206_p11  ;;  %s192_s11 = sshll.u32 %s190_s10, 4  ;;  %s193_s11 = int_to_ptr.hbm [resolvable:$true] %s192_s11 }
  0x16   : > { %s183_s12 = scalar_lea.vmem [#allocation4], %s732_s27  ;;  %s180_s20 = scalar_lea.sflag [#allocation5], %s157_s25 }
  0x17   : > { %s194_s18 = sshll.u32 %s183_s12, 4  ;;  %210 = sbr.rel (%p207_p12) target bundleno = 428 (0x1ac), region = 32  ;;  %s195_s18 = int_to_ptr.vmem [resolvable:$true] %s194_s18 }
  0x18   : > { %759 = dma.hbm_to_vmem [thread:$0]  (!%p754_p9), %s193_s11, 256, %s195_s18, %s180_s20  }
  0x19   : > { %s212_s21 = sand.u32 (!%p207_p12), 1, %s954_s13  }
  0x1a   : > { %s739_s22 = sshll.u32 (!%p207_p12), %s212_s21, 4  ;;  %s213_s28 = scalar_lea.sflag (!%p207_p12), [#allocation3], %s212_s21 }
  0x1b   : > { %s1058_s29 = scalar_lea.vmem (!%p207_p12), [#allocation2], %s739_s22 }
  0x1c   : > { %941 = dma.done.wait (%p1037_p7), %s213_s28, 256  }
  0x1d   : > { %943 = vsyncadd (%p1037_p7), %s213_s28, 4294967040  ;;  %s223_s26 = scalar_lea.sflag [#allocation5], %s212_s21  ;;  %s1064_s27 = scalar_lea.vmem [#allocation4], %s739_s22 }
  0x1e   : > { %945 = dma.done.wait (%p1037_p7), %s223_s26, 256  }
  0x1f   : > { %947 = vsyncadd (%p1037_p7), %s223_s26, 4294967040  ;;  %p260_p13 = scmp.lt.s32.totalorder %s962_s15, 1  ;;  %v972_v0 = vmov 0   ;;  %v276_v14 = vld [vmem:[%s1064_s27] sm:$0xff]  ;;  %v277_v15 = vld [vmem:[%s1064_s27 + $0x8] sm:$0xff]  ;;  %v973_v60 = vmov 0.0  }
  0x20   : > { %811 = vset.pattern.permute.xlu0 %v972_v0  ;;  %v274_v16 = vld [vmem:[%s1058_s29] sm:$0xff]  ;;  %v275_v17 = vld [vmem:[%s1058_s29 + $0x8] sm:$0xff]  ;;  %v296_v18 = vsub.f32 -4.0, %v276_v14  ;;  %v297_v19 = vsub.f32 -4.0, %v277_v15  ;;  %v305_v20 = vsub.f32 8.0, %v276_v14  ;;  %v306_v21 = vsub.f32 8.0, %v277_v15 }
  0x21   : > { %s1344_s15 = smov (!%p260_p13, %s962_s15), 1  ;;  %v309_v22 = vsub.f32 %v274_v16, %v276_v14  ;;  %v310_v23 = vsub.f32 %v275_v17, %v277_v15 }
  0x22   : > { %s741_s25 = sshll.u32 %s1344_s15, 3 }
  0x23   : > { %s263_s5 = scalar_lea.vmem %s1313_s2, %s741_s25  ;;  %s1278_s7 = scalar_lea.vmem %s1314_s3, %s741_s25 }
  0x24   : > { %v278_v1 = vld [vmem:[%s263_s5] sm:$0xff] }
  0x25   : > { %v279_v2 = vmul.f32 1.442695, %v278_v1 }
  0x27   : > { %812 = vpow2.f32 %v279_v2 }
  0x2d   : > { %v813_v3 = vpop.eup %812 }
  0x2e   : > { %814 = vrcp.f32 %v813_v3  ;;  %v292_v6 = vand.u32 2147483648, %v813_v3  ;;  %vm286_vm0 = vweird.f32 %v813_v3  ;;  %v290_v8 = vand.u32 2147483647, %v813_v3 }
  0x30   : > { %v293_v10 = vor.u32 1.1754944e-38, %v292_v6  ;;  %vm291_vm3 = vcmp.eq.f32.partialorder %v290_v8, 8.507059e+37 }
  0x34   : > { %v815_v4 = vpop.eup %814 }
  0x35   : > { %v282_v5 = vmul.f32 %v815_v4, %v813_v3  ;;  %vm287_vm1 = vweird.f32 %v815_v4 }
  0x36   : > { %vm288_vm2 = vmor %vm286_vm0, %vm287_vm1 }
  0x37   : > { %v283_v7 = vsub.f32 1.0, %v282_v5 }
  0x39   : > { %v284_v9 = vmul.f32 %v815_v4, %v283_v7 }
  0x3b   : > { %v285_v11 = vadd.f32 %v815_v4, %v284_v9 }
  0x3d   : > { %v289_v12 = vsel %vm288_vm2, %v815_v4, %v285_v11 }
  0x3e   : > { %v294_v13 = vsel %vm291_vm3, %v293_v10, %v289_v12 }
  0x3f   : > { %300 = vperm.xlu0 %811, %v294_v13  }
  0x47   : > { %583 = vperm.xlu0 %811, %v278_v1  }
  0xb1   : > { %v301_v24 = vpop.permute.xlu0 %300 }
  0xb2   : > { %v303_v25 = vmul.f32 %v301_v24, %v296_v18  ;;  %v1084_v26 = vmul.f32 %v301_v24, %v297_v19  ;;  %v307_v27 = vmul.f32 %v305_v20, %v301_v24  ;;  %v1086_v28 = vmul.f32 %v306_v21, %v301_v24 }
  0xb3   : > { %v1088_v29 = vmul.f32 %v309_v22, %v301_v24  ;;  %v1090_v30 = vmul.f32 %v310_v23, %v301_v24 }
  0xb4   : > { %v313_v31 = vsub.f32 0.0, %v303_v25  ;;  %v314_v32 = vsub.f32 0.0, %v1084_v26  ;;  %v417_v33 = vsub.f32 0.0, %v307_v27  ;;  %v418_v34 = vsub.f32 0.0, %v1086_v28 }
  0xb5   : > { %vm521_vm4 = vcmp.le.f32.partialorder %v303_v25, 30.0  ;;  %vm522_vm5 = vcmp.le.f32.partialorder %v1084_v26, 30.0  ;;  %vm523_vm6 = vcmp.ge.f32.partialorder %v307_v27, -30.0  ;;  %vm524_vm7 = vcmp.ge.f32.partialorder %v1086_v28, -30.0 }
  0xb6   : > { %v315_v35 = vsub.f32 0.0, %v313_v31  ;;  %v316_v36 = vsub.f32 0.0, %v314_v32  ;;  %v419_v37 = vsub.f32 0.0, %v417_v33  ;;  %v420_v38 = vsub.f32 0.0, %v418_v34  ;;  %vm1096_vm8 = vmand %vm521_vm4, %vm523_vm6 }
  0xb7   : > { %vm1100_vm9 = vmand %vm522_vm5, %vm524_vm7  ;;  %v529_v41 = vand.u32 2147483647, %v303_v25  ;;  %vm588_vm10 = vcmp.lt.f32.partialorder %v1088_v29, %v303_v25  ;;  %v530_v46 = vand.u32 2147483647, %v1084_v26  ;;  %v531_v47 = vand.u32 2147483647, %v307_v27 }
  0xb8   : > { %v1104_v42 = vmul.f32 0.70710677, %v315_v35  ;;  %v1106_v43 = vmul.f32 0.70710677, %v316_v36  ;;  %v1108_v44 = vmul.f32 0.70710677, %v419_v37  ;;  %vm589_vm11 = vcmp.lt.f32.partialorder %v1090_v30, %v1084_v26 }
  0xb9   : > { %v1111_v45 = vmul.f32 0.70710677, %v420_v38  ;;  %v532_v50 = vand.u32 2147483647, %v1086_v28  ;;  %vm527_vm12 = vcmp.lt.f32.partialorder %v307_v27, 0.0  ;;  %vm533_vm13 = vcmp.ge.f32.partialorder %v529_v41, %v531_v47 }
  0xba   : > { %v1117_v48 = vand.u32 2147483647, %v1104_v42  ;;  %v1120_v49 = vand.u32 2147483647, %v1106_v43  ;;  %v1124_v51 = vand.u32 2147483647, %v1108_v44  ;;  %vm1136_vm0 = vmor %vm527_vm12, %vm533_vm13  ;;  %vm590_vm4 = vcmp.gt.f32.partialorder %v1088_v29, %v307_v27 }
  0xbb   : > { %v1127_v52 = vand.u32 2147483647, %v1111_v45  ;;  %vm534_vm14 = vcmp.ge.f32.partialorder %v530_v46, %v532_v50  ;;  %vm528_vm15 = vcmp.lt.f32.partialorder %v1086_v28, 0.0  ;;  %vm591_vm5 = vcmp.gt.f32.partialorder %v1090_v30, %v1086_v28  ;;  %vm1161_vm6 = vmor %vm588_vm10, %vm590_vm4 }
  0xbc   : > { %v321_v53 = vmul.f32 0.5, %v1117_v48  ;;  %v322_v54 = vmul.f32 0.5, %v1120_v49  ;;  %v425_v55 = vmul.f32 0.5, %v1124_v51  ;;  %vm1142_vm1 = vmor %vm528_vm15, %vm534_vm14 }
  0xbd   : > { %v426_v56 = vmul.f32 0.5, %v1127_v52  ;;  %vm1178_vm15 = vmor %vm589_vm11, %vm591_vm5 }
  0xbe   : > { %v323_v57 = vadd.f32 1.0, %v321_v53  ;;  %v324_v58 = vadd.f32 1.0, %v322_v54  ;;  %v1133_v59 = vadd.f32 1.0, %v425_v55 }
  0xbf   : > { %v1140_v61 = vadd.f32 1.0, %v426_v56 }
  0xc0   : > { %816 = vrcp.f32 %v323_v57  ;;  %v334_v0 = vand.u32 2147483647, %v323_v57  ;;  %v336_v1 = vand.u32 2147483648, %v323_v57  ;;  %vm330_vm7 = vweird.f32 %v323_v57 }
  0xc1   : > { %818 = vrcp.f32 %v324_v58  ;;  %vm345_vm12 = vweird.f32 %v324_v58  ;;  %v349_v8 = vand.u32 2147483647, %v324_v58  ;;  %v351_v9 = vand.u32 2147483648, %v324_v58 }
  0xc2   : > { %820 = vrcp.f32 %v1133_v59  ;;  %vm1166_vm13 = vcmp.eq.f32.partialorder %v334_v0, 8.507059e+37  ;;  %v337_v13 = vor.u32 1.1754944e-38, %v336_v1  ;;  %v438_v20 = vand.u32 2147483647, %v1133_v59 }
  0xc3   : > { %822 = vrcp.f32 %v1140_v61  ;;  %v440_v21 = vand.u32 2147483648, %v1133_v59  ;;  %vm350_vm10 = vcmp.eq.f32.partialorder %v349_v8, 8.507059e+37  ;;  %v352_v27 = vor.u32 1.1754944e-38, %v351_v9 }
  0xc4   : > { %v453_v26 = vand.u32 2147483647, %v1140_v61  ;;  %v455_v33 = vand.u32 2147483648, %v1140_v61  ;;  %vm1331_vm5 = vweird.f32 %v1133_v59 }
  0xc5   : > { %v441_v36 = vor.u32 1.1754944e-38, %v440_v21 }
  0xc6   : > { %v817_v63 = vpop.eup %816  ;;  %v456_v54 = vor.u32 1.1754944e-38, %v455_v33 }
  0xc7   : > { %v819_v2 = vpop.eup %818  ;;  %v326_v3 = vmul.f32 %v817_v63, %v323_v57  ;;  %vm331_vm14 = vweird.f32 %v817_v63 }
  0xc8   : > { %v821_v5 = vpop.eup %820  ;;  %v341_v6 = vmul.f32 %v819_v2, %v324_v58  ;;  %vm346_vm4 = vweird.f32 %v819_v2  ;;  %vm332_vm2 = vmor %vm330_vm7, %vm331_vm14 }
  0xc9   : > { %v327_v7 = vsub.f32 1.0, %v326_v3  ;;  %v430_v10 = vmul.f32 %v821_v5, %v1133_v59  ;;  %v823_v11 = vpop.eup %822  ;;  %vm435_vm3 = vweird.f32 %v821_v5  ;;  %vm347_vm11 = vmor %vm345_vm12, %vm346_vm4  ;;  %vm449_vm12 = vweird.f32 %v1140_v61 }
  0xca   : > { %v342_v14 = vsub.f32 1.0, %v341_v6  ;;  %v445_v17 = vmul.f32 %v823_v11, %v1140_v61  ;;  %vm436_vm7 = vmor %vm1331_vm5, %vm435_vm3  ;;  %vm450_vm14 = vweird.f32 %v823_v11  ;;  %vm454_vm3 = vcmp.eq.f32.partialorder %v453_v26, 8.507059e+37 }
  0xcb   : > { %v328_v15 = vmul.f32 %v817_v63, %v327_v7  ;;  %v431_v16 = vsub.f32 1.0, %v430_v10  ;;  %vm406_vm4 = vcmp.ge.f32.partialorder %v1106_v43, 0.0  ;;  %vm510_vm5 = vcmp.ge.f32.partialorder %v1111_v45, 0.0 }
  0xcc   : > { %v343_v19 = vmul.f32 %v819_v2, %v342_v14  ;;  %v446_v24 = vsub.f32 1.0, %v445_v17 }
  0xcd   : > { %v329_v22 = vadd.f32 %v817_v63, %v328_v15  ;;  %v432_v23 = vmul.f32 %v821_v5, %v431_v16 }
  0xce   : > { %v344_v25 = vadd.f32 %v819_v2, %v343_v19  ;;  %v447_v32 = vmul.f32 %v823_v11, %v446_v24 }
  0xcf   : > { %v333_v28 = vsel %vm332_vm2, %v817_v63, %v329_v22  ;;  %v433_v31 = vadd.f32 %v821_v5, %v432_v23  ;;  %vm439_vm2 = vcmp.eq.f32.partialorder %v438_v20, 8.507059e+37 }
  0xd0   : > { %v1190_v34 = vsel %vm1166_vm13, %v337_v13, %v333_v28  ;;  %v348_v35 = vsel %vm347_vm11, %v819_v2, %v344_v25  ;;  %v448_v50 = vadd.f32 %v823_v11, %v447_v32  ;;  %vm451_vm13 = vmor %vm449_vm12, %vm450_vm14  ;;  %vm509_vm11 = vcmp.ge.f32.partialorder %v1108_v44, 0.0 }
  0xd1   : > { %v1194_v37 = vsel %vm350_vm10, %v352_v27, %v348_v35  ;;  %v355_v38 = vmul.f32 0.17087276, %v1190_v34  ;;  %v437_v41 = vsel %vm436_vm7, %v821_v5, %v433_v31  ;;  %824 = vlog2.f32 %v1190_v34  ;;  %vm1332_vm7 = vmand %vm1096_vm8, %vm1136_vm0 }
  0xd2   : > { %v356_v46 = vmul.f32 0.17087276, %v1194_v37  ;;  %v1198_v47 = vsel %vm439_vm2, %v441_v36, %v437_v41  ;;  %v452_v57 = vsel %vm451_vm13, %v823_v11, %v448_v50  ;;  %826 = vlog2.f32 %v1194_v37  ;;  %vm1333_vm14 = vmmov %vm1332_vm7 }
  0xd3   : > { %v357_v53 = vadd.f32 -0.82215226, %v355_v38  ;;  %v459_v55 = vmul.f32 0.17087276, %v1198_v47  ;;  %v1203_v59 = vsel %vm454_vm3, %v456_v54, %v452_v57  ;;  %828 = vlog2.f32 %v1198_v47  ;;  %vm1334_vm2 = vmand %vm1100_vm9, %vm1142_vm1 }
  0xd4   : > { %v358_v56 = vadd.f32 -0.82215226, %v356_v46  ;;  %v460_v1 = vmul.f32 0.17087276, %v1203_v59  ;;  %830 = vlog2.f32 %v1203_v59  ;;  %vm405_vm10 = vcmp.ge.f32.partialorder %v1104_v42, 0.0  ;;  %vm1335_vm12 = vmmov %vm1334_vm2 }
  0xd5   : > { %v359_v58 = vmul.f32 %v357_v53, %v1190_v34  ;;  %v461_v63 = vadd.f32 -0.82215226, %v459_v55  ;;  %vm272_vm8 = vcmask 7168  }
  0xd6   : > { %v360_v0 = vmul.f32 %v358_v56, %v1194_v37  ;;  %v462_v5 = vadd.f32 -0.82215226, %v460_v1  ;;  %273 = vst.msk [vmem:[%s1278_s7] sm:$0xff] %vm272_vm8, %v973_v60 }
  0xd7   : > { %v361_v2 = vadd.f32 1.4885159, %v359_v58  ;;  %v463_v61 = vmul.f32 %v461_v63, %v1198_v47 }
  0xd8   : > { %v362_v3 = vadd.f32 1.4885159, %v360_v0  ;;  %v464_v9 = vmul.f32 %v462_v5, %v1203_v59  ;;  %v825_v0 = vpop.eup %824 }
  0xd9   : > { %v363_v6 = vmul.f32 %v361_v2, %v1190_v34  ;;  %v465_v7 = vadd.f32 1.4885159, %v463_v61  ;;  %v827_v61 = vpop.eup %826 }
  0xda   : > { %v364_v8 = vmul.f32 %v362_v3, %v1194_v37  ;;  %v466_v13 = vadd.f32 1.4885159, %v464_v9 }
  0xdb   : > { %v365_v10 = vadd.f32 -1.135204, %v363_v6  ;;  %v467_v11 = vmul.f32 %v465_v7, %v1198_v47  ;;  %v829_v6 = vpop.eup %828 }
  0xdc   : > { %v366_v12 = vadd.f32 -1.135204, %v364_v8  ;;  %v468_v17 = vmul.f32 %v466_v13, %v1203_v59  ;;  %v394_v13 = vmul.f32 0.6931472, %v827_v61 }
  0xdd   : > { %v367_v14 = vmul.f32 %v365_v10, %v1190_v34  ;;  %v469_v15 = vadd.f32 -1.135204, %v467_v11  ;;  %v392_v10 = vmul.f32 0.6931472, %v825_v0 }
  0xde   : > { %v368_v16 = vmul.f32 %v366_v12, %v1194_v37  ;;  %v470_v22 = vadd.f32 -1.135204, %v468_v17  ;;  %v395_v17 = vmul.f32 %v1117_v48, %v1117_v48 }
  0xdf   : > { %v369_v19 = vadd.f32 0.27886808, %v367_v14  ;;  %v471_v20 = vmul.f32 %v469_v15, %v1198_v47  ;;  %v831_v15 = vpop.eup %830 }
  0xe0   : > { %v370_v21 = vadd.f32 0.27886808, %v368_v16  ;;  %v472_v27 = vmul.f32 %v470_v22, %v1203_v59  ;;  %v396_v22 = vmul.f32 %v1120_v49, %v1120_v49  ;;  %v498_v48 = vmul.f32 0.6931472, %v831_v15 }
  0xe1   : > { %v371_v23 = vmul.f32 %v369_v19, %v1190_v34  ;;  %v473_v24 = vadd.f32 0.27886808, %v471_v20  ;;  %v496_v20 = vmul.f32 0.6931472, %v829_v6  ;;  %v500_v49 = vmul.f32 %v1127_v52, %v1127_v52 }
  0xe2   : > { %v372_v25 = vmul.f32 %v370_v21, %v1194_v37  ;;  %v474_v32 = vadd.f32 0.27886808, %v472_v27 }
  0xe3   : > { %v373_v26 = vadd.f32 -0.18628806, %v371_v23  ;;  %v475_v28 = vmul.f32 %v473_v24, %v1198_v47 }
  0xe4   : > { %v374_v31 = vadd.f32 -0.18628806, %v372_v25  ;;  %v476_v38 = vmul.f32 %v474_v32, %v1203_v59  ;;  %v397_v25 = vsub.f32 %v392_v10, %v395_v17 }
  0xe5   : > { %v375_v33 = vmul.f32 %v373_v26, %v1190_v34  ;;  %v477_v35 = vadd.f32 -0.18628806, %v475_v28  ;;  %v499_v26 = vmul.f32 %v1124_v51, %v1124_v51  ;;  %v398_v28 = vsub.f32 %v394_v13, %v396_v22 }
  0xe6   : > { %v376_v36 = vmul.f32 %v374_v31, %v1194_v37  ;;  %v478_v53 = vadd.f32 -0.18628806, %v476_v38 }
  0xe7   : > { %v377_v41 = vadd.f32 0.09678418, %v375_v33  ;;  %v479_v46 = vmul.f32 %v477_v35, %v1198_v47  ;;  %v501_v35 = vsub.f32 %v496_v20, %v499_v26 }
  0xe8   : > { %v378_v50 = vadd.f32 0.09678418, %v376_v36  ;;  %v480_v57 = vmul.f32 %v478_v53, %v1203_v59 }
  0xe9   : > { %v379_v54 = vmul.f32 %v377_v41, %v1190_v34  ;;  %v481_v55 = vadd.f32 0.09678418, %v479_v46 }
  0xea   : > { %v380_v56 = vmul.f32 %v378_v50, %v1194_v37  ;;  %v482_v2 = vadd.f32 0.09678418, %v480_v57  ;;  %v502_v50 = vsub.f32 %v498_v48, %v500_v49 }
  0xeb   : > { %v381_v58 = vadd.f32 0.37409195, %v379_v54  ;;  %v483_v63 = vmul.f32 %v481_v55, %v1198_v47 }
  0xec   : > { %v382_v1 = vadd.f32 0.37409195, %v380_v56  ;;  %v484_v8 = vmul.f32 %v482_v2, %v1203_v59 }
  0xed   : > { %v383_v3 = vmul.f32 %v381_v58, %v1190_v34  ;;  %v485_v5 = vadd.f32 0.37409195, %v483_v63 }
  0xee   : > { %v384_v7 = vmul.f32 %v382_v1, %v1194_v37  ;;  %v486_v14 = vadd.f32 0.37409195, %v484_v8 }
  0xef   : > { %v385_v9 = vadd.f32 1.0000237, %v383_v3  ;;  %v487_v11 = vmul.f32 %v485_v5, %v1198_v47 }
  0xf0   : > { %v386_v12 = vadd.f32 1.0000237, %v384_v7  ;;  %v488_v23 = vmul.f32 %v486_v14, %v1203_v59 }
  0xf1   : > { %v387_v16 = vmul.f32 %v385_v9, %v1190_v34  ;;  %v489_v19 = vadd.f32 1.0000237, %v487_v11 }
  0xf2   : > { %v388_v21 = vmul.f32 %v386_v12, %v1194_v37  ;;  %v490_v31 = vadd.f32 1.0000237, %v488_v23 }
  0xf3   : > { %v389_v24 = vadd.f32 -1.2655122, %v387_v16  ;;  %v491_v27 = vmul.f32 %v489_v19, %v1198_v47 }
  0xf4   : > { %v390_v34 = vadd.f32 -1.2655122, %v388_v21  ;;  %v492_v36 = vmul.f32 %v490_v31, %v1203_v59 }
  0xf5   : > { %v399_v32 = vadd.f32 %v397_v25, %v389_v24  ;;  %v493_v33 = vadd.f32 -1.2655122, %v491_v27 }
  0xf6   : > { %v400_v37 = vadd.f32 %v398_v28, %v390_v34  ;;  %v494_v47 = vadd.f32 -1.2655122, %v492_v36  ;;  %v573_v28 = vmul.f32 -0.5, %v1088_v29 }
  0xf7   : > { %v401_v38 = vmul.f32 1.442695, %v399_v32  ;;  %v503_v41 = vadd.f32 %v501_v35, %v493_v33  ;;  %v596_v33 = vlaneseq }
  0xf8   : > { %v403_v46 = vmul.f32 1.442695, %v400_v37  ;;  %v504_v53 = vadd.f32 %v502_v50, %v494_v47  ;;  %v575_v36 = vmul.f32 %v573_v28, %v1088_v29 }
  0xf9   : > { %832 = vpow2.f32 %v401_v38  ;;  %v505_v51 = vmul.f32 1.442695, %v503_v41 }
  0xfa   : > { %834 = vpow2.f32 %v403_v46  ;;  %v507_v54 = vmul.f32 1.442695, %v504_v53 }
  0xfb   : > { %836 = vpow2.f32 %v505_v51  ;;  %v597_v51 = vand.u32 127, %v596_v33 }
  0xfc   : > { %838 = vpow2.f32 %v507_v54 }
  0xff   : > { %v833_v55 = vpop.eup %832 }
 0x100   : > { %v835_v56 = vpop.eup %834  ;;  %v407_v57 = vsub.f32 2.0, %v833_v55 }
 0x101   : > { %v837_v58 = vpop.eup %836  ;;  %v408_v59 = vsub.f32 2.0, %v835_v56  ;;  %v743_v56 = vadd.f32 -0.9189385, %v575_v36 }
 0x102   : > { %840 = vlog2.f32 %v407_v57  ;;  %v511_v63 = vsub.f32 2.0, %v837_v58  ;;  %v839_v52 = vpop.eup %838 }
 0x103   : > { %842 = vlog2.f32 %v408_v59  ;;  %v512_v0 = vsub.f32 2.0, %v839_v52  ;;  %v584_v59 = vpop.permute.xlu0 %583  ;;  %v598_v52 = vadd.s32 128, %v597_v51 }
 0x104   : > { %844 = vlog2.f32 %v511_v63 }
 0x105   : > { %846 = vlog2.f32 %v512_v0  ;;  %vm604_vm1 = vcmp.lt.s32.totalorder %v598_v52, 200 }
 0x108   : > { %v841_v1 = vpop.eup %840 }
 0x109   : > { %v843_v2 = vpop.eup %842  ;;  %v410_v61 = vmul.f32 0.6931472, %v841_v1 }
 0x10a   : > { %v845_v3 = vpop.eup %844  ;;  %v412_v5 = vmul.f32 0.6931472, %v843_v2 }
 0x10b   : > { %v413_v6 = vsel %vm405_vm10, %v399_v32, %v410_v61  ;;  %v514_v7 = vmul.f32 0.6931472, %v845_v3  ;;  %v847_v10 = vpop.eup %846  ;;  %v574_v32 = vmul.f32 -0.5, %v1090_v30 }
 0x10c   : > { %v414_v8 = vsel %vm406_vm4, %v400_v37, %v412_v5  ;;  %v415_v9 = vadd.f32 -0.6931472, %v413_v6  ;;  %v516_v12 = vmul.f32 0.6931472, %v847_v10  ;;  %v607_v6 = vld [vmem:[%s1278_s7] sm:$0xff] }
 0x10d   : > { %v517_v11 = vsel %vm509_vm11, %v503_v41, %v514_v7  ;;  %v416_v14 = vadd.f32 -0.6931472, %v414_v8  ;;  %v576_v50 = vmul.f32 %v574_v32, %v1090_v30 }
 0x10e   : > { %v519_v13 = vadd.f32 -0.6931472, %v517_v11  ;;  %v518_v15 = vsel %vm510_vm5, %v504_v53, %v516_v12 }
 0x10f   : > { %v520_v17 = vadd.f32 -0.6931472, %v518_v15  ;;  %v744_v63 = vadd.f32 -0.9189385, %v576_v50 }
 0x110   : > { %v539_v42 = vsel %vm1332_vm7, %v519_v13, %v415_v9  ;;  %v541_v43 = vsub.f32 %v415_v9, %v519_v13  ;;  %v543_v16 = vsub.f32 %v519_v13, %v415_v9 }
 0x111   : > { %v540_v45 = vsel %vm1334_vm2, %v520_v17, %v416_v14  ;;  %v542_v19 = vsub.f32 %v416_v14, %v520_v17  ;;  %v544_v20 = vsub.f32 %v520_v17, %v416_v14 }
 0x112   : > { %v545_v44 = vsel %vm1333_vm14, %v541_v43, %v543_v16 }
 0x113   : > { %v547_v21 = vmul.f32 1.442695, %v545_v44  ;;  %v546_v22 = vsel %vm1335_vm12, %v542_v19, %v544_v20 }
 0x114   : > { %v549_v39 = vmul.f32 1.442695, %v546_v22 }
 0x115   : > { %848 = vpow2.f32 %v547_v21 }
 0x116   : > { %850 = vpow2.f32 %v549_v39 }
 0x11b   : > { %v849_v23 = vpop.eup %848 }
 0x11c   : > { %v551_v40 = vsub.f32 0.0, %v849_v23  ;;  %v851_v24 = vpop.eup %850 }
 0x11d   : > { %v552_v25 = vsub.f32 0.0, %v851_v24 }
 0x11e   : > { %v553_v62 = vadd.f32 1.0, %v551_v40  ;;  %v556_v27 = vmul.f32 -0.5, %v551_v40  ;;  %v559_v48 = vand.u32 2147483647, %v551_v40 }
 0x11f   : > { %v562_v26 = vadd.f32 1.0, %v552_v25  ;;  %v565_v34 = vmul.f32 -0.5, %v552_v25  ;;  %v568_v41 = vand.u32 2147483647, %v552_v25 }
 0x120   : > { %852 = vlog2.f32 %v553_v62  ;;  %v557_v31 = vadd.f32 1.0, %v556_v27  ;;  %vm560_vm9 = vcmp.lt.f32.partialorder %v559_v48, 0.0004427343 }
 0x121   : > { %854 = vlog2.f32 %v562_v26  ;;  %v566_v37 = vadd.f32 1.0, %v565_v34  ;;  %vm569_vm0 = vcmp.lt.f32.partialorder %v568_v41, 0.0004427343 }
 0x122   : > { %v558_v38 = vmul.f32 %v557_v31, %v551_v40 }
 0x123   : > { %v567_v54 = vmul.f32 %v566_v37, %v552_v25 }
 0x126   : > { %v853_v35 = vpop.eup %852 }
 0x127   : > { %v555_v49 = vmul.f32 0.6931472, %v853_v35  ;;  %v855_v46 = vpop.eup %854 }
 0x128   : > { %v564_v53 = vmul.f32 0.6931472, %v855_v46 }
 0x129   : > { %v561_v47 = vsel %vm560_vm9, %v558_v38, %v555_v49 }
 0x12a   : > { %v571_v55 = vadd.f32 %v561_v47, %v539_v42  ;;  %v570_v57 = vsel %vm569_vm0, %v567_v54, %v564_v53 }
 0x12b   : > { %v572_v29 = vadd.f32 %v570_v57, %v540_v45 }
 0x12c   : > { %v579_v58 = vsub.f32 %v743_v56, %v571_v55 }
 0x12d   : > { %v580_v1 = vsub.f32 %v744_v63, %v572_v29 }
 0x12e   : > { %v586_v0 = vsub.f32 %v579_v58, %v584_v59 }
 0x12f   : > { %v587_v30 = vsub.f32 %v580_v1, %v584_v59 }
 0x130   : > { %v594_v2 = vsel %vm1161_vm6, -inf, %v586_v0 }
 0x131   : > { %v595_v61 = vsel %vm1178_vm15, -inf, %v587_v30 }
 0x132   : > { %v606_v3 = vsel %vm604_vm1, %v595_v61, 0.0 }
 0x133   : > { %v608_v5 = vadd.f32 %v606_v3, %v594_v2 }
 0x135   : > { %609 = vadd.xlane.f32.xlu1 %v608_v5 }
 0x1a8   : > { %v610_v7 = vpop.xlane.xlu1 %609 }
 0x1a9   : > { %v611_v8 = vadd.f32 %v610_v7, %v607_v6 }
 0x1ab   : > { %613 = vst.msk [vmem:[%s1278_s7] sm:$0xff] %vm272_vm8, %v611_v8 }
 0x1ac PF: > { %s19_s17 = sadd.s32 1, %s970_s17   ;;  %s1336_s12 = smov %s954_s13 }
 0x1ad   : > { %p16_p0 = scmp.ge.s32.totalorder %s19_s17, 4   ;;  %s1337_s13 = smov %s958_s14 }
 0x1ae   : > { %s1338_s14 = smov %s1043_s24  ;;  %s1339_s15 = smov %s966_s16 }
 0x1af   : > { %s1340_s16 = smov %s1342_s19  ;;  %18 = sbr.rel (!%p16_p0) target bundleno = 6 (0x6), region = 92 }
 0x1b4   :  { %633 = vsyncpa [#allocation3], 1 }
 0x1b5   :  { %635 = vsyncpa [#allocation3 + $0x1], 1 }
 0x1b6   :  { %636 = vsyncpa [#allocation5], 1 }
 0x1b7   :  { %638 = vsyncpa [#allocation5 + $0x1], 1 }

</bundles_post_ra>
